<compile_context>
chip_gen: v7x
topology: tpu7x:2x2x1
jax: 0.10.0
libtpu: 0.0.40
codegen_flags: <defaults>
</compile_context>

<pallas_src>
import functools
import math

import jax
import jax.numpy as jnp
from jax.experimental import pallas as pl
from jax.experimental.pallas import tpu as pltpu


_SINGLE_TILE_BYTES = 1 * 1024 * 1024   # below this, one tile; above, >= 2 (v7x)
_MiB = 1024 * 1024


def _cdiv(a: int, b: int) -> int:
    return -(-a // b)


def _vmem_limit_bytes() -> int:
    """Chip-aware scoped-VMEM request (half of physical, capped at 64 MiB)."""
    phys = None
    try:
        info = pltpu.get_tpu_info()
        phys = getattr(info, "vmem_capacity_bytes", None)
    except Exception:
        phys = None
    if not phys:
        phys = 64 * _MiB  # conservative (v7x per-TensorCore)
    return int(min(phys // 2, 64 * _MiB))


def _tiling(rows: int, bytes_per_row: int, vmem_limit: int, row_align: int):
    """Pick (tile_rows, num_tiles) for the folded output slab.

    bytes_per_row: total output bytes per slab row (summed over all outputs,
    single buffer).  Small slabs -> one full-extent tile.  Larger slabs -> at
    least 2 tiles (one per v7x TensorCore / DMA-overlap), multiple-of-row_align
    rows, each tile within the chip-aware VMEM budget.
    """
    budget = vmem_limit // 2                       # double-buffered outputs + headroom
    cap_rows = (budget // (2 * bytes_per_row)) // row_align * row_align
    cap_rows = max(row_align, cap_rows)

    if rows * bytes_per_row <= _SINGLE_TILE_BYTES and rows <= cap_rows:
        return rows, 1

    def rup(x):
        return _cdiv(x, row_align) * row_align

    half_rows = rup(_cdiv(rows, 2))
    tile_rows = min(cap_rows, max(512, half_rows))
    if _cdiv(rows, tile_rows) < 2:                 # force >= 2 tiles for v7x sharding
        tile_rows = min(cap_rows, half_rows)
    tile_rows = max(row_align, tile_rows)
    num_tiles = _cdiv(rows, tile_rows)
    return tile_rows, num_tiles


def _coeff_table(dim: int, half: int, fold: int, theta: float) -> jax.Array:
    """(2, width) f32 per-column coefficients for the folded layout.

    Column c of the slab corresponds to frequency index j = c % half of
    position-offset q = c // half.  Row 0 holds inv_freq[j] (bit-exact match of
    the PyTorch buffer), row 1 holds q as float32.
    """
    width = fold * half
    inv_half = 1.0 / (theta ** (jnp.arange(0, dim, 2, dtype=jnp.float32) / dim))  # (half,)
    inv = jnp.tile(inv_half, fold)                                                 # (width,)
    q = (jnp.arange(width, dtype=jnp.int32) // half).astype(jnp.float32)           # (width,)
    return jnp.stack([inv, q], axis=0)                                             # (2, width)


def _angles(coeff_ref, tile_rows: int, fold: int):
    """(tile_rows, width) angles s * inv_freq[j] for this tile (single rounding)."""
    co = coeff_ref[...]                      # (2, width) f32
    inv = co[0:1, :]                         # inv_freq per column
    qf = co[1:2, :]                          # column position offset (f32 integer)
    row0 = pl.program_id(0) * tile_rows
    r = jax.lax.broadcasted_iota(jnp.int32, (tile_rows, 1), 0)
    s = ((row0 + r) * fold).astype(jnp.float32) + qf     # exact integer position
    return s * inv


def _freqs_kernel(coeff_ref, o_ref, *, fold: int):
    o_ref[...] = _angles(coeff_ref, o_ref.shape[0], fold)


def _cos_sin_kernel(coeff_ref, cos_ref, sin_ref, *, fold: int):
    ang = _angles(coeff_ref, cos_ref.shape[0], fold)
    cos_ref[...] = jnp.cos(ang).astype(cos_ref.dtype)
    sin_ref[...] = jnp.sin(ang).astype(sin_ref.dtype)


def _fold_params(seqlen: int, half: int):
    # Fold `fold` consecutive positions into one slab row so the lane (last)
    # dim is a multiple of 128 -> unmasked, lane-dense stores.
    fold = 128 // math.gcd(half, 128)
    width = fold * half
    rows = _cdiv(seqlen, fold)
    return fold, width, rows


def vision_rotary_freqs(seqlen: int, dim: int, theta: float = 10000.0) -> jax.Array:
    """outer(arange(seqlen), inv_freq) for Qwen2.5-VL vision RoPE, via Pallas."""
    half = (dim + 1) // 2                     # len(arange(0, dim, 2))
    if seqlen <= 0:
        return jnp.zeros((max(seqlen, 0), half), jnp.float32)

    fold, width, rows = _fold_params(seqlen, half)
    vmem_limit = _vmem_limit_bytes()
    tile_rows, num_tiles = _tiling(rows, width * 4, vmem_limit, row_align=8)
    padded_rows = tile_rows * num_tiles
    padded_seqlen = padded_rows * fold

    coeff = _coeff_table(dim, half, fold, theta)
    kernel = functools.partial(_freqs_kernel, fold=fold)
    out_bytes = padded_rows * width * 4

    folded = pl.pallas_call(
        kernel,
        out_shape=jax.ShapeDtypeStruct((padded_rows, width), jnp.float32),
        grid=(num_tiles,),
        in_specs=[pl.BlockSpec((2, width), lambda i: (0, 0))],
        out_specs=pl.BlockSpec((tile_rows, width), lambda i: (i, 0)),
        compiler_params=pltpu.CompilerParams(
            dimension_semantics=("parallel",),
            vmem_limit_bytes=vmem_limit),
        cost_estimate=pl.CostEstimate(
            flops=2 * padded_rows * width,
            transcendentals=0,
            bytes_accessed=out_bytes + coeff.size * 4),
    )(coeff)

    freqs = folded.reshape(padded_seqlen, half)      # row-major un-fold (free)
    if padded_seqlen != seqlen:
        freqs = freqs[:seqlen]
    return freqs


def vision_rotary_cos_sin(seqlen: int, dim: int, theta: float = 10000.0,
                          dtype=jnp.float32):
    """Fused (cos, sin) of the (seqlen, dim//2) freq table, single pallas_call.

    Downstream (rot_pos_emb gather + cat(rope, rope)) only needs gathers /
    concats of these tables — cos/sin never re-runs as separate XLA passes.
    """
    half = (dim + 1) // 2
    dtype = jnp.dtype(dtype)
    if seqlen <= 0:
        z = jnp.zeros((max(seqlen, 0), half), dtype)
        return z, z

    itemsize = dtype.itemsize
    row_align = max(8, 32 // itemsize)        # keep sub-32-bit sublane packing whole
    fold, width, rows = _fold_params(seqlen, half)
    vmem_limit = _vmem_limit_bytes()
    tile_rows, num_tiles = _tiling(rows, 2 * width * itemsize, vmem_limit, row_align)
    padded_rows = tile_rows * num_tiles
    padded_seqlen = padded_rows * fold

    coeff = _coeff_table(dim, half, fold, theta)
    kernel = functools.partial(_cos_sin_kernel, fold=fold)
    out_bytes = 2 * padded_rows * width * itemsize

    cos_f, sin_f = pl.pallas_call(
        kernel,
        out_shape=(jax.ShapeDtypeStruct((padded_rows, width), dtype),
                   jax.ShapeDtypeStruct((padded_rows, width), dtype)),
        grid=(num_tiles,),
        in_specs=[pl.BlockSpec((2, width), lambda i: (0, 0))],
        out_specs=(pl.BlockSpec((tile_rows, width), lambda i: (i, 0)),
                   pl.BlockSpec((tile_rows, width), lambda i: (i, 0))),
        compiler_params=pltpu.CompilerParams(
            dimension_semantics=("parallel",),
            vmem_limit_bytes=vmem_limit),
        cost_estimate=pl.CostEstimate(
            flops=2 * padded_rows * width,
            transcendentals=2 * padded_rows * width,
            bytes_accessed=out_bytes + coeff.size * 4),
    )(coeff)

    cos = cos_f.reshape(padded_seqlen, half)
    sin = sin_f.reshape(padded_seqlen, half)
    if padded_seqlen != seqlen:
        cos, sin = cos[:seqlen], sin[:seqlen]
    return cos, sin


class Qwen2_5_VisionRotaryEmbedding:
    """JAX/Pallas port of the PyTorch module: forward(seqlen) -> (seqlen, dim//2)."""

    def __init__(self, dim: int, theta: float = 10000.0, *,
                 min_pallas_elements: int = 64 * 1024) -> None:
        self.dim = dim
        self.theta = theta
        # Interface parity with the PyTorch buffer.
        self.inv_freq = 1.0 / (
            theta ** (jnp.arange(0, dim, 2, dtype=jnp.float32) / dim)
        )
        # Below this element count plain XLA beats the pallas_call fixed cost
        # (typical Qwen2.5-VL tables are ~100-200 KB and take this bypass).
        self.min_pallas_elements = min_pallas_elements

    def __call__(self, seqlen: int) -> jax.Array:
        half = self.inv_freq.shape[0]
        if seqlen * half < self.min_pallas_elements:
            seq = jnp.arange(seqlen, dtype=jnp.float32)
            return jnp.outer(seq, self.inv_freq)
        return vision_rotary_freqs(seqlen, self.dim, self.theta)

    def cos_sin(self, seqlen: int, dtype=jnp.float32):
        """Fused (cos, sin) tables of forward(seqlen) — for the ViT RoPE path."""
        half = self.inv_freq.shape[0]
        if seqlen * half < self.min_pallas_elements:
            f = jnp.outer(jnp.arange(seqlen, dtype=jnp.float32), self.inv_freq)
            return jnp.cos(f).astype(dtype), jnp.sin(f).astype(dtype)
        return vision_rotary_cos_sin(seqlen, self.dim, self.theta, dtype=dtype)


# TODO(synk): the rest of Qwen2_5_VisionTransformer (Conv3d patch_embed, the
# get_window_index host bookkeeping, VisionAttention blocks, MLP, patch merger)
# is not ported here; the full end-to-end win is fusing these cos/sin tables
# and the rotation (pltpu.roll) directly into the vision attention kernel so
# the position embeddings never round-trip HBM at all.


if __name__ == "__main__":
    _ = jax.random.PRNGKey(0)  # forward takes only an int seqlen; key kept for convention

    def reference(seqlen: int, dim: int, theta: float = 10000.0) -> jax.Array:
        inv = 1.0 / (theta ** (jnp.arange(0, dim, 2, dtype=jnp.float32) / dim))
        return jnp.outer(jnp.arange(seqlen, dtype=jnp.float32), inv)

    # Freqs kernel: tiny single-row slab (8, 32); Qwen-like head_dim=80
    # (dim=40, half=20, fold=32) with exact fold multiple (64, 40); a seqlen
    # needing row padding + trailing slice (74, 40); different half/fold (200, 24).
    for seqlen, dim in [(8, 32), (64, 40), (74, 40), (200, 24)]:
        out = jax.block_until_ready(vision_rotary_freqs(seqlen, dim))
        ref = reference(seqlen, dim)
        assert out.shape == (seqlen, dim // 2), (out.shape, seqlen, dim)
        assert out.dtype == jnp.float32, out.dtype
        assert jnp.allclose(out, ref, rtol=2e-5, atol=1e-6), f"mismatch for {(seqlen, dim)}"

    # Multi-tile path (slab > 1 MiB -> >= 2 grid tiles, v7x two-TC shard).
    seqlen, dim = 16384, 40
    out = jax.block_until_ready(vision_rotary_freqs(seqlen, dim))
    ref = reference(seqlen, dim)
    assert out.shape == (seqlen, dim // 2)
    assert jnp.allclose(out, ref, rtol=2e-5, atol=1e-6), "multi-tile mismatch"

    # Fused cos/sin kernel, f32.
    seqlen, dim = 300, 40
    cos, sin = vision_rotary_cos_sin(seqlen, dim)
    jax.block_until_ready((cos, sin))
    ref = reference(seqlen, dim)
    assert cos.shape == (seqlen, dim // 2) and sin.shape == (seqlen, dim // 2)
    assert jnp.allclose(cos, jnp.cos(ref), atol=2e-3), "cos mismatch"
    assert jnp.allclose(sin, jnp.sin(ref), atol=2e-3), "sin mismatch"

    # Fused cos/sin kernel, bf16 output (attention dtype).
    seqlen, dim = 128, 32
    cos_b, sin_b = vision_rotary_cos_sin(seqlen, dim, dtype=jnp.bfloat16)
    jax.block_until_ready((cos_b, sin_b))
    ref = reference(seqlen, dim)
    assert cos_b.dtype == jnp.bfloat16 and sin_b.dtype == jnp.bfloat16
    assert jnp.allclose(cos_b.astype(jnp.float32), jnp.cos(ref), atol=1e-2)
    assert jnp.allclose(sin_b.astype(jnp.float32), jnp.sin(ref), atol=1e-2)

    # Module-level path with the Pallas kernel forced on.
    rope = Qwen2_5_VisionRotaryEmbedding(dim=40, min_pallas_elements=0)
    out = jax.block_until_ready(rope(64))
    assert jnp.allclose(out, reference(64, 40), rtol=2e-5, atol=1e-6)
    cos_m, sin_m = rope.cos_sin(64)
    jax.block_until_ready((cos_m, sin_m))
    assert jnp.allclose(cos_m, jnp.cos(reference(64, 40)), atol=2e-3)

    # Module-level path exercising the tiny-shape XLA bypass (default threshold).
    rope_small = Qwen2_5_VisionRotaryEmbedding(dim=32)
    out_small = jax.block_until_ready(rope_small(8))
    assert jnp.allclose(out_small, reference(8, 32), rtol=2e-5, atol=1e-6)

    print("KERNEL_OK")
</pallas_src>

<mosaic_0001>
module attributes {stable_mosaic.version = 11 : i64} {
  func.func @_freqs_kernel(%arg0: i32, %arg1: memref<2x128xf32, #tpu.memory_space<vmem>>, %arg2: memref<1x128xf32, #tpu.memory_space<vmem>>) attributes {dimension_semantics = [#tpu.dimension_semantics<parallel>], iteration_bounds = array<i64: 1>, scalar_prefetch = 0 : i64, scratch_operands = 0 : i64, tpu.core_type = #tpu.core_type<tc>, window_params = [{pipeline_mode = #tpu.pipeline_mode<synchronous>, transform_indices = @transform_0, window_bounds = array<i64: 2, 128>}, {transform_indices = @transform_1, window_bounds = array<i64: 1, 128>}]} {
    %c0 = arith.constant 0 : index
    %c0_0 = arith.constant 0 : index
    %0 = vector.load %arg1[%c0, %c0_0] : memref<2x128xf32, #tpu.memory_space<vmem>>, vector<2x128xf32>
    %1 = vector.extract_strided_slice %0 {offsets = [0, 0], sizes = [1, 128], strides = [1, 1]} : vector<2x128xf32> to vector<1x128xf32>
    %2 = vector.extract_strided_slice %0 {offsets = [1, 0], sizes = [1, 128], strides = [1, 1]} : vector<2x128xf32> to vector<1x128xf32>
    %c1_i32 = arith.constant 1 : i32
    %3 = arith.muli %arg0, %c1_i32 : i32
    %4 = tpu.iota {dimensions = array<i32: 0>} : vector<1x1xi32>
    %5 = vector.broadcast %3 : i32 to vector<1x1xi32>
    %6 = arith.addi %5, %4 : vector<1x1xi32>
    %c8_i32 = arith.constant 8 : i32
    %7 = vector.broadcast %c8_i32 : i32 to vector<1x1xi32>
    %8 = arith.muli %6, %7 : vector<1x1xi32>
    %9 = arith.sitofp %8 : vector<1x1xi32> to vector<1x1xf32>
    %10 = vector.broadcast %9 : vector<1x1xf32> to vector<1x128xf32>
    %11 = arith.addf %10, %2 : vector<1x128xf32>
    %12 = arith.mulf %11, %1 : vector<1x128xf32>
    %c0_1 = arith.constant 0 : index
    %c0_2 = arith.constant 0 : index
    %13 = vector.load %arg2[%c0_1, %c0_2] : memref<1x128xf32, #tpu.memory_space<vmem>>, vector<1x128xf32>
    tpu.vector_store %arg2[%c0_1, %c0_2], %12 {strides = array<i32>} : memref<1x128xf32, #tpu.memory_space<vmem>>, vector<1x128xf32>,
    return
  }
  func.func @transform_0(%arg0: i32) -> (i32, i32) {
    %c0_i32 = arith.constant 0 : i32
    %c0_i32_0 = arith.constant 0 : i32
    %c0_i32_1 = arith.constant 0 : i32
    return %c0_i32, %c0_i32_0 : i32, i32
  }
  func.func @transform_1(%arg0: i32) -> (i32, i32) {
    %c0_i32 = arith.constant 0 : i32
    %c0_i32_0 = arith.constant 0 : i32
    return %arg0, %c0_i32 : i32, i32
  }
}

</mosaic_0001>

<bundles_post_ra>
// kernel: tpu_custom_call.1
= control target key start
LH: loop header
LB: loop body
LE: loop exit
PB: predicated region body
PF: predicated region fallthrough
CT: control target
= control target key end

     0   :  { %6 = vsyncpa [#allocation3], 0  ;;  %s135_s0 = inlined_call_operand.hbm [shape: f32[2,128], index: 0, kind: input, shape index: {}]   ;;  %s136_s1 = inlined_call_operand.hbm [shape: f32[1,128], index: 1, kind: output, shape index: {}]  }
   0x1   :  { %7 = vsyncpa [#allocation4], 0  ;;  %s99_s6 = smov [#allocation2]   ;;  %s51_s10 = scalar_lea.hbm %s135_s0, 32 }
   0x2   :  { %s14_s7 = sshll.u32 %s99_s6, 4  ;;  %p52_p0 = scmp.ne.s32.totalorder %s135_s0, %s51_s10  ;;  %s15_s7 = int_to_ptr.vmem [resolvable:$true] %s14_s7 }
   0x3   :  { %p55_p1 = scmp.lt.u32.totalorder %s51_s10, %s135_s0 }
   0x5   :  { %p57_p2 = pnand %p55_p1, %p52_p0 }
   0x7   :  { %60 = shalt.err (!%p57_p2)
}
   0x8   :  { %s61_s15 = scalar_lea.vmem %s15_s7, 32  ;;  %p66_p4 = scmp.lt.s32.totalorder %s15_s7, %s15_s7 }
   0x9   :  { %p62_p3 = scmp.ne.s32.totalorder %s15_s7, %s61_s15  ;;  %p67_p5 = scmp.lt.s32.totalorder %s61_s15, %s61_s15 }
   0xb   :  { %p68_p6 = por %p67_p5, %p66_p4 }
   0xd   :  { %p69_p7 = pnand %p68_p6, %p62_p3 }
   0xf   :  { %72 = shalt.err (!%p69_p7)
}
  0x10   :  { %17 = dma.hbm_to_vmem [thread:$0]  %s135_s0, 32, %s15_s7, [#allocation3]  }
  0x11   :  { %95 = dma.done.wait [#allocation3], 32  }
  0x12   :  { %96 = vsyncadd [#allocation3], 4294967264  ;;  %v22_v0 = vlaneseq  ;;  %v21_v4 = vld [vmem:[#allocation2] sm:$0x3]  ;;  %s100_s18 = smov [#allocation5]  }
  0x13   :  { %v29_v5 = vrot.slane %v21_v4, 1  ;;  %s40_s19 = sshll.u32 %s100_s18, 4  ;;  %s41_s19 = int_to_ptr.vmem [resolvable:$true] %s40_s19 }
  0x14   :  { %v23_v1 = vshrl.u32 %v22_v0, 7  ;;  %s73_s20 = scalar_lea.vmem %s41_s19, 16  ;;  %s77_s21 = scalar_lea.vmem %s41_s19, 32 }
  0x15   :  { %p74_p8 = scmp.ne.s32.totalorder %s41_s19, %s73_s20  ;;  %p78_p9 = scmp.lt.s32.totalorder %s41_s19, %s41_s19 }
  0x16   :  { %v26_v2 = vmul.u32 8, %v23_v1  ;;  %p79_p10 = scmp.lt.s32.totalorder %s77_s21, %s73_s20 }
  0x18   :  { %v27_v3 = vcvt.s32.f32 %v26_v2  ;;  %p80_p11 = por %p79_p10, %p78_p9 }
  0x1a   :  { %v31_v6 = vadd.f32 %v29_v5, %v27_v3  ;;  %p81_p12 = pnand %p80_p11, %p74_p8 }
  0x1c   :  { %v32_v7 = vmul.f32 %v31_v6, %v21_v4 }
  0x1e   :  { %33 = vst [vmem:[#allocation5] sm:$0x1] %v32_v7 }
  0x1f   :  { %84 = shalt.err (!%p81_p12)
}
  0x20   :  { %s85_s23 = scalar_lea.hbm %s136_s1, 16 }
  0x21   :  { %p86_p13 = scmp.ne.s32.totalorder %s136_s1, %s85_s23  ;;  %p89_p0 = scmp.lt.u32.totalorder %s85_s23, %s136_s1 }
  0x23   :  { %p91_p1 = pnand %p89_p0, %p86_p13 }
  0x25   :  { %94 = shalt.err (!%p91_p1)
}
  0x26   :  { %43 = dma.vmem_to_hbm [thread:$0]  %s41_s19, 16, %s136_s1, [#allocation4]  }
  0x27   :  { %97 = dma.done.wait [#allocation4], 16  }
  0x28   :  { %98 = vsyncadd [#allocation4], 4294967280 }
  0x29   :  { %47 = vsyncpa [#allocation3], 1 }
  0x2a   :  { %48 = vsyncpa [#allocation4], 1 }

</bundles_post_ra>
